<compile_context>
chip_gen: v7x
topology: tpu7x:2x2x1
jax: 0.10.0
libtpu: 0.0.40
codegen_flags: <defaults>
</compile_context>

<pallas_src>
import jax
import jax.numpy as jnp
from jax.experimental import pallas as pl
from jax.experimental.pallas import tpu as pltpu

_LANES = 512          # lane-dense last dim (multiple of 128)
_MAX_TILE_ROWS = 1024 # ~2 MiB per f32 tile -> fits v5e/v7x scoped VMEM budgets


def _partial_sum_kernel(x_ref, acc_ref):
    """Accumulate per-lane partial sums (f32) across the reduction grid axis."""
    @pl.when(pl.program_id(0) == 0)
    def _():
        acc_ref[...] = jnp.zeros_like(acc_ref)
    acc_ref[...] += jnp.sum(x_ref[...].astype(jnp.float32), axis=0,
                            keepdims=True)


def _subtract_kernel(mean_ref, x_ref, o_ref):
    """Broadcast-subtract the precomputed global mean (scalar from SMEM)."""
    o_ref[...] = x_ref[...] - mean_ref[0, 0].astype(o_ref.dtype)


def _round_up(a, b):
    return ((a + b - 1) // b) * b


def centered_layer(x):
    """X - X.mean() over ALL elements (matches torch Tensor.mean() default)."""
    orig_shape = x.shape
    orig_dtype = x.dtype
    n = int(x.size)

    # Lane-dense slab: fully flatten, pad with zeros, reshape to (rows, 512).
    flat = x.reshape(-1)
    rows = max(1, -(-n // _LANES))          # ceil(n / LANES)
    rows = _round_up(rows, 8)               # sublane granularity
    tile_rows = min(_MAX_TILE_ROWS, rows)
    rows = _round_up(rows, tile_rows)
    padded = rows * _LANES
    if padded != n:
        flat = jnp.pad(flat, (0, padded - n))
    x2d = flat.reshape(rows, _LANES)
    n_tiles = rows // tile_rows

    # ---- Pass 1: tiled global reduction (per-lane partial sums, f32) ----
    partial = pl.pallas_call(
        _partial_sum_kernel,
        out_shape=jax.ShapeDtypeStruct((1, _LANES), jnp.float32),
        grid_spec=pltpu.PrefetchScalarGridSpec(
            num_scalar_prefetch=0,
            grid=(n_tiles,),
            in_specs=[pl.BlockSpec((tile_rows, _LANES), lambda i: (i, 0))],
            out_specs=pl.BlockSpec((1, _LANES), lambda i: (0, 0)),
        ),
        compiler_params=pltpu.CompilerParams(
            dimension_semantics=("arbitrary",)),
    )(x2d)

    # Finish the (tiny, 512-element) reduction and fold 1/N as a static const.
    total = jnp.sum(partial)
    mean = (total * (1.0 / n)).astype(jnp.float32).reshape(1, 1)

    # ---- Pass 2: tiled, pipelined broadcast-subtract ----
    # NOTE: if the caller can donate the input, input_output_aliases={1: 0}
    # would let XLA reuse the buffer; omitted here since x is not donated.
    out2d = pl.pallas_call(
        _subtract_kernel,
        out_shape=jax.ShapeDtypeStruct((rows, _LANES), orig_dtype),
        grid_spec=pltpu.PrefetchScalarGridSpec(
            num_scalar_prefetch=0,
            grid=(n_tiles,),
            in_specs=[
                pl.BlockSpec(memory_space=pltpu.MemorySpace.SMEM),  # mean (1,1)
                pl.BlockSpec((tile_rows, _LANES), lambda i: (i, 0)),
            ],
            out_specs=pl.BlockSpec((tile_rows, _LANES), lambda i: (i, 0)),
        ),
        compiler_params=pltpu.CompilerParams(
            dimension_semantics=("parallel",)),
    )(mean, x2d)

    return out2d.reshape(-1)[:n].reshape(orig_shape)


if __name__ == "__main__":
    key = jax.random.PRNGKey(0)
    # Small NCHW-style input consistent with typical usage of the module.
    x = jax.random.normal(key, (2, 4, 16, 16), dtype=jnp.float32)

    y = centered_layer(x)
    jax.block_until_ready(y)

    # Correctness check against plain-JAX reference.
    ref = x - jnp.mean(x)
    assert y.shape == x.shape and y.dtype == x.dtype
    assert jnp.allclose(y, ref, atol=1e-5, rtol=1e-5)
    # Centered output should have ~zero mean.
    assert abs(float(jnp.mean(y))) < 1e-5

    print("KERNEL_OK")
</pallas_src>

<mosaic_0001>
module attributes {stable_mosaic.version = 11 : i64} {
  func.func @_partial_sum_kernel(%arg0: i32, %arg1: memref<8x512xf32, #tpu.memory_space<vmem>>, %arg2: memref<1x512xf32, #tpu.memory_space<vmem>>) attributes {dimension_semantics = [#tpu.dimension_semantics<arbitrary>], iteration_bounds = array<i64: 1>, scalar_prefetch = 0 : i64, scratch_operands = 0 : i64, tpu.core_type = #tpu.core_type<tc>, window_params = [{transform_indices = @transform_0, window_bounds = array<i64: 8, 512>}, {pipeline_mode = #tpu.pipeline_mode<synchronous>, transform_indices = @transform_1, window_bounds = array<i64: 1, 512>}]} {
    %c0_i32 = arith.constant 0 : i32
    %0 = arith.cmpi eq, %arg0, %c0_i32 : i32
    %1 = arith.extui %0 : i1 to i32
    %c0_i32_0 = arith.constant 0 : i32
    %2 = arith.cmpi ne, %1, %c0_i32_0 : i32
    scf.if %2 {
      %cst_6 = arith.constant 0.000000e+00 : f32
      %9 = vector.broadcast %cst_6 : f32 to vector<1x512xf32>
      %c0_7 = arith.constant 0 : index
      %c0_8 = arith.constant 0 : index
      %10 = vector.load %arg2[%c0_7, %c0_8] : memref<1x512xf32, #tpu.memory_space<vmem>>, vector<1x512xf32>
      tpu.vector_store %arg2[%c0_7, %c0_8], %9 {strides = array<i32>} : memref<1x512xf32, #tpu.memory_space<vmem>>, vector<1x512xf32>,
    } else {
    }
    %c0 = arith.constant 0 : index
    %c0_1 = arith.constant 0 : index
    %3 = vector.load %arg2[%c0, %c0_1] : memref<1x512xf32, #tpu.memory_space<vmem>>, vector<1x512xf32>
    %c0_2 = arith.constant 0 : index
    %c0_3 = arith.constant 0 : index
    %4 = vector.load %arg1[%c0_2, %c0_3] : memref<8x512xf32, #tpu.memory_space<vmem>>, vector<8x512xf32>
    %cst = arith.constant dense<0.000000e+00> : vector<512xf32>
    %5 = vector.multi_reduction <add>, %4, %cst [0] : vector<8x512xf32> to vector<512xf32>
    %6 = vector.shape_cast %5 : vector<512xf32> to vector<1x512xf32>
    %7 = arith.addf %3, %6 : vector<1x512xf32>
    %c0_4 = arith.constant 0 : index
    %c0_5 = arith.constant 0 : index
    %8 = vector.load %arg2[%c0_4, %c0_5] : memref<1x512xf32, #tpu.memory_space<vmem>>, vector<1x512xf32>
    tpu.vector_store %arg2[%c0_4, %c0_5], %7 {strides = array<i32>} : memref<1x512xf32, #tpu.memory_space<vmem>>, vector<1x512xf32>,
    return
  }
  func.func @transform_0(%arg0: i32) -> (i32, i32) {
    %c0_i32 = arith.constant 0 : i32
    %c0_i32_0 = arith.constant 0 : i32
    return %arg0, %c0_i32 : i32, i32
  }
  func.func @transform_1(%arg0: i32) -> (i32, i32) {
    %c0_i32 = arith.constant 0 : i32
    %c0_i32_0 = arith.constant 0 : i32
    %c0_i32_1 = arith.constant 0 : i32
    return %c0_i32, %c0_i32_0 : i32, i32
  }
}

</mosaic_0001>

<bundles_post_ra>
// kernel: tpu_custom_call.1
= control target key start
LH: loop header
LB: loop body
LE: loop exit
PB: predicated region body
PF: predicated region fallthrough
CT: control target
= control target key end

     0   :  { %6 = vsyncpa [#allocation3], 0  ;;  %s207_s0 = inlined_call_operand.hbm [shape: f32[8,512], index: 0, kind: input, shape index: {}]   ;;  %s208_s1 = inlined_call_operand.hbm [shape: f32[1,512], index: 1, kind: output, shape index: {}]  }
   0x1   :  { %7 = vsyncpa [#allocation4], 0  ;;  %s161_s6 = smov [#allocation2]   ;;  %s113_s10 = scalar_lea.hbm %s207_s0, 512 }
   0x2   :  { %s14_s7 = sshll.u32 %s161_s6, 4  ;;  %p114_p0 = scmp.ne.s32.totalorder %s207_s0, %s113_s10  ;;  %s15_s7 = int_to_ptr.vmem [resolvable:$true] %s14_s7 }
   0x3   :  { %p117_p1 = scmp.lt.u32.totalorder %s113_s10, %s207_s0 }
   0x5   :  { %p119_p2 = pnand %p117_p1, %p114_p0 }
   0x7   :  { %122 = shalt.err (!%p119_p2)
}
   0x8   :  { %s123_s15 = scalar_lea.vmem %s15_s7, 512  ;;  %p128_p4 = scmp.lt.s32.totalorder %s15_s7, %s15_s7 }
   0x9   :  { %p124_p3 = scmp.ne.s32.totalorder %s15_s7, %s123_s15  ;;  %p129_p5 = scmp.lt.s32.totalorder %s123_s15, %s123_s15 }
   0xb   :  { %p130_p6 = por %p129_p5, %p128_p4 }
   0xd   :  { %p131_p7 = pnand %p130_p6, %p124_p3 }
   0xf   :  { %134 = shalt.err (!%p131_p7)
}
  0x10   :  { %17 = dma.hbm_to_vmem [thread:$0]  %s207_s0, 512, %s15_s7, [#allocation3]  }
  0x11   :  { %157 = dma.done.wait [#allocation3], 512  }
  0x12   :  { %158 = vsyncadd [#allocation3], 4294966784  ;;  %v25_v0 = vlaneseq  ;;  %v162_v2 = vmov 0.0   ;;  %v31_v3 = vld [vmem:[#allocation2] sm:$0xff]  ;;  %v32_v4 = vld [vmem:[#allocation2 + $0x8] sm:$0xff]  ;;  %s164_s0 = smov [#allocation5]  }
  0x13   :  { %v33_v5 = vld [vmem:[#allocation2 + $0x10] sm:$0xff]  ;;  %v34_v6 = vld [vmem:[#allocation2 + $0x18] sm:$0xff]  ;;  %v35_v7 = vrot.slane %v31_v3, 4  ;;  %v41_v8 = vrot.slane %v32_v4, 4  ;;  %v163_v14 = vmov 1966171168  }
  0x14   :  { %vm187_vm0 = vcmp.lt.s32.totalorder %v25_v0, 512  ;;  %v47_v9 = vrot.slane %v33_v5, 4  ;;  %v53_v10 = vrot.slane %v34_v6, 4  ;;  %v66_v15 = vunpack.c.l.s4 %v163_v14  ;;  %s100_s18 = sshll.u32 %s164_s0, 4  ;;  %s101_s18 = int_to_ptr.vmem [resolvable:$true] %s100_s18 }
  0x15   :  { %29 = vst.msk [vmem:[#allocation5] sm:$0xf] %vm187_vm0, %v162_v2  ;;  %v36_v11 = vadd.f32 %v35_v7, %v31_v3  ;;  %v42_v12 = vadd.f32 %v41_v8, %v32_v4  ;;  %v69_v21 = vshrl.u32 %v25_v0, 7  ;;  %s135_s19 = scalar_lea.vmem %s101_s18, 64  ;;  %p140_p9 = scmp.lt.s32.totalorder %s101_s18, %s101_s18 }
  0x16   :  { %v48_v13 = vadd.f32 %v47_v9, %v33_v5  ;;  %v54_v16 = vadd.f32 %v53_v10, %v34_v6  ;;  %v67_v25 = vunpack.c.0.s8 %v66_v15  ;;  %p136_p8 = scmp.ne.s32.totalorder %s101_s18, %s135_s19  ;;  %p141_p10 = scmp.lt.s32.totalorder %s135_s19, %s135_s19 }
  0x17   :  { %v37_v17 = vrot.slane %v36_v11, 2  ;;  %v43_v18 = vrot.slane %v42_v12, 2 }
  0x18   :  { %v49_v19 = vrot.slane %v48_v13, 2  ;;  %v55_v20 = vrot.slane %v54_v16, 2  ;;  %v70_v34 = vsub.s32 %v67_v25, %v69_v21  ;;  %p142_p11 = por %p141_p10, %p140_p9 }
  0x19   :  { %v38_v22 = vadd.f32 %v37_v17, %v36_v11  ;;  %v44_v23 = vadd.f32 %v43_v18, %v42_v12 }
  0x1a   :  { %v50_v24 = vadd.f32 %v49_v19, %v48_v13  ;;  %v56_v26 = vadd.f32 %v55_v20, %v54_v16  ;;  %p143_p12 = pnand %p142_p11, %p136_p8 }
  0x1b   :  { %v39_v27 = vrot.slane %v38_v22, 1  ;;  %v45_v28 = vrot.slane %v44_v23, 1 }
  0x1c   :  { %v51_v29 = vrot.slane %v50_v24, 1  ;;  %v57_v30 = vrot.slane %v56_v26, 1  ;;  %v30_v41 = vld [vmem:[#allocation5] sm:$0xf] }
  0x1d   :  { %v40_v31 = vadd.f32 %v39_v27, %v38_v22  ;;  %v46_v32 = vadd.f32 %v45_v28, %v44_v23 }
  0x1e   :  { %v52_v33 = vadd.f32 %v51_v29, %v50_v24  ;;  %v58_v35 = vadd.f32 %v57_v30, %v56_v26 }
  0x1f   :  { %v63_v36 = vcombine.low %v40_v31, %v46_v32 }
  0x20   :  { %v64_v37 = vcombine.low %v52_v33, %v58_v35 }
  0x21   :  { %v71_v38 = vrot.slane %v63_v36, %v70_v34 }
  0x22   :  { %v78_v39 = vrot.slane %v64_v37, %v70_v34 }
  0x24   :  { %v79_v40 = vcombine.low %v71_v38, %v78_v39 }
  0x26   :  { %v86_v42 = vrot.slane %v79_v40, %v70_v34 }
  0x28   :  { %v88_v43 = vadd.f32 %v86_v42, %v30_v41 }
  0x2a   :  { %93 = vst.msk [vmem:[#allocation5] sm:$0xf] %vm187_vm0, %v88_v43 }
  0x2b   :  { %146 = shalt.err (!%p143_p12)
}
  0x2c   :  { %s147_s22 = scalar_lea.hbm %s208_s1, 64 }
  0x2d   :  { %p148_p13 = scmp.ne.s32.totalorder %s208_s1, %s147_s22  ;;  %p151_p0 = scmp.lt.u32.totalorder %s147_s22, %s208_s1 }
  0x2f   :  { %p153_p1 = pnand %p151_p0, %p148_p13 }
  0x31   :  { %156 = shalt.err (!%p153_p1)
}
  0x32   :  { %103 = dma.vmem_to_hbm [thread:$0]  %s101_s18, 64, %s208_s1, [#allocation4]  }
  0x33   :  { %159 = dma.done.wait [#allocation4], 64  }
  0x34   :  { %160 = vsyncadd [#allocation4], 4294967232 }
  0x35   :  { %107 = vsyncpa [#allocation3], 1 }
  0x36   :  { %108 = vsyncpa [#allocation4], 1 }

</bundles_post_ra>
